<compile_context>
chip_gen: v6e
topology: v6e:2x2x1
jax: 0.10.0
libtpu: 0.0.40
codegen_flags: <defaults>
</compile_context>

<pallas_src>
import functools
import math

import numpy as np
import jax
import jax.numpy as jnp
from jax.experimental import pallas as pl
from jax.experimental.pallas import tpu as pltpu

_LANES = 128


def _round_up(x, m):
    return ((x + m - 1) // m) * m


def _sublane(dtype):
    itemsize = np.dtype(dtype).itemsize
    return max(8, 32 // itemsize)  # 8 for f32, 16 for bf16, 32 for int8


def _chip_kind():
    try:
        return jax.devices()[0].device_kind.lower()
    except Exception:
        return ""


@functools.lru_cache(maxsize=None)
def _vmem_budget_and_limit():
    """Per-generation (streaming VMEM budget bytes, vmem_limit_bytes-or-None)."""
    kind = _chip_kind()
    if "v7" in kind:
        # v7x: 64 MiB physical VMEM per TC -> stay under the 32 MiB scoped default.
        return 20 << 20, 40 << 20
    if "v6" in kind:
        # v6e: 128 MiB VMEM, ~1.4 TB/s HBM -> 3-4 MiB/stream tiles shrink the
        # ~0.35 us fixed per-grid-step overhead to a few percent.
        return 32 << 20, 64 << 20
    if "v5e" in kind or "v5 lite" in kind or "v5lite" in kind:
        # v5e: ~820 GB/s; per-step overhead already small, keep modest tiles and
        # the default scoped VMEM.
        return 10 << 20, None
    return 16 << 20, 48 << 20


def _choose_tile_rows(rows, sub, bytes_per_row, budget_bytes):
    """Largest (rows-of-128-lanes) tile whose whole VMEM working set (all
    double-buffered streams + scratch) stays under budget_bytes, clamped so the
    parallel grid axis has >= 2 blocks when possible (v7x megacore)."""
    max_rows = max(sub, (budget_bytes // bytes_per_row) // sub * sub)
    if rows >= 2 * sub:
        max_rows = min(max_rows, _round_up(-(-rows // 2), sub))
    return min(_round_up(rows, sub), max_rows)


def _to_lane_dense(x, sub):
    """Flatten to a lane-dense (rows, 128) slab, padding only to (sub, 128)
    granularity.  No pad (and no copy) when x.size is already a multiple."""
    total = x.size
    granule = sub * _LANES
    pad = _round_up(total, granule) - total
    flat = x.reshape(-1)
    if pad:
        flat = jnp.pad(flat, (0, pad))
    return flat.reshape((total + pad) // _LANES, _LANES), pad


def _from_lane_dense(y2, orig_shape, total, pad):
    if pad:
        # Ragged case only: drop the (sub,128)-granule padding.
        return y2.reshape(-1)[:total].reshape(orig_shape)
    return y2.reshape(orig_shape)  # pure reshape, no HBM pass


# ----------------------------------------------------------------------------
# Kernels (v_threshold / v_reset are Python floats closed over via partial, so
# they stay weakly typed and never upcast bf16/f16 tiles).
# ----------------------------------------------------------------------------
def _ifnode_kernel(v_ref, dv_ref, spike_ref, v_out_ref, *, v_threshold, v_reset):
    v_new = v_ref[...] + dv_ref[...]
    fired = (v_new - v_threshold) > 0.0
    spike_ref[...] = fired.astype(spike_ref.dtype)
    v_out_ref[...] = jnp.where(fired, v_reset, v_new).astype(v_out_ref.dtype)


def _ifnode_first_step_kernel(dv_ref, spike_ref, v_out_ref, *, v_threshold, v_reset):
    # First timestep: membrane is still the scalar reset value -> bake it in
    # (one fewer full-size HBM input stream).
    v_new = dv_ref[...] + v_reset
    fired = (v_new - v_threshold) > 0.0
    spike_ref[...] = fired.astype(spike_ref.dtype)
    v_out_ref[...] = jnp.where(fired, v_reset, v_new).astype(v_out_ref.dtype)


def _ifnode_seq_kernel(dv_ref, spike_ref, v_out_ref, v_scratch, *, v_threshold, v_reset):
    # grid = (spatial blocks ["parallel"], T ["arbitrary"]).  The membrane is
    # kept in a float32 VMEM scratch across all T steps of a spatial block
    # (reads only dv, writes only spikes per step, writes v once at the end).
    t = pl.program_id(1)

    @pl.when(t == 0)
    def _():
        v_scratch[...] = jnp.full(v_scratch.shape, v_reset, dtype=v_scratch.dtype)

    v_new = v_scratch[...] + dv_ref[0].astype(jnp.float32)
    fired = (v_new - v_threshold) > 0.0
    spike_ref[0] = fired.astype(spike_ref.dtype)
    v_scratch[...] = jnp.where(fired, v_reset, v_new)

    @pl.when(t == pl.num_programs(1) - 1)
    def _():
        v_out_ref[...] = v_scratch[...].astype(v_out_ref.dtype)


# ----------------------------------------------------------------------------
# jit-compiled implementations
# ----------------------------------------------------------------------------
def _ifnode_forward_impl(v, dv, *, v_threshold, v_reset, spike_dtype):
    orig_shape, dtype, total = dv.shape, dv.dtype, dv.size
    sub = max(_sublane(dtype), _sublane(spike_dtype))
    budget, vmem_limit = _vmem_budget_and_limit()

    v2, pad = _to_lane_dense(v, sub)
    dv2, _ = _to_lane_dense(dv, sub)
    rows = v2.shape[0]

    item = np.dtype(dtype).itemsize
    spike_item = np.dtype(spike_dtype).itemsize
    # Double-buffered streams: v, dv, v_new (input dtype) + spike.
    bytes_per_row = 2 * _LANES * (3 * item + spike_item)
    tile_rows = _choose_tile_rows(rows, sub, bytes_per_row, budget)

    spec = pl.BlockSpec((tile_rows, _LANES), lambda i: (i, 0))
    kernel = functools.partial(
        _ifnode_kernel, v_threshold=float(v_threshold), v_reset=float(v_reset))

    spike2, v_new2 = pl.pallas_call(
        kernel,
        out_shape=(
            jax.ShapeDtypeStruct((rows, _LANES), spike_dtype),
            jax.ShapeDtypeStruct((rows, _LANES), dtype),
        ),
        grid=(pl.cdiv(rows, tile_rows),),
        in_specs=[spec, spec],
        out_specs=(spec, spec),
        # Membrane update is in place: v input (0) aliases v_new output (1).
        # The jit wrapper donates v so no defensive copy is inserted.
        input_output_aliases={0: 1},
        compiler_params=pltpu.CompilerParams(
            dimension_semantics=("parallel",),
            vmem_limit_bytes=vmem_limit),
    )(v2, dv2)

    spike = _from_lane_dense(spike2, orig_shape, total, pad)
    v_new = _from_lane_dense(v_new2, orig_shape, total, pad)
    return spike, v_new


_ifnode_forward_jit = jax.jit(
    _ifnode_forward_impl,
    static_argnames=("v_threshold", "v_reset", "spike_dtype"),
    donate_argnums=(0,),
)


def _ifnode_first_step_impl(dv, *, v_threshold, v_reset, spike_dtype):
    orig_shape, dtype, total = dv.shape, dv.dtype, dv.size
    sub = max(_sublane(dtype), _sublane(spike_dtype))
    budget, vmem_limit = _vmem_budget_and_limit()

    dv2, pad = _to_lane_dense(dv, sub)
    rows = dv2.shape[0]

    item = np.dtype(dtype).itemsize
    spike_item = np.dtype(spike_dtype).itemsize
    # Only 3 streams here: dv, v_new (input dtype) + spike.
    bytes_per_row = 2 * _LANES * (2 * item + spike_item)
    tile_rows = _choose_tile_rows(rows, sub, bytes_per_row, budget)

    spec = pl.BlockSpec((tile_rows, _LANES), lambda i: (i, 0))
    kernel = functools.partial(
        _ifnode_first_step_kernel, v_threshold=float(v_threshold), v_reset=float(v_reset))

    spike2, v_new2 = pl.pallas_call(
        kernel,
        out_shape=(
            jax.ShapeDtypeStruct((rows, _LANES), spike_dtype),
            jax.ShapeDtypeStruct((rows, _LANES), dtype),
        ),
        grid=(pl.cdiv(rows, tile_rows),),
        in_specs=[spec],
        out_specs=(spec, spec),
        compiler_params=pltpu.CompilerParams(
            dimension_semantics=("parallel",),
            vmem_limit_bytes=vmem_limit),
    )(dv2)

    spike = _from_lane_dense(spike2, orig_shape, total, pad)
    v_new = _from_lane_dense(v_new2, orig_shape, total, pad)
    return spike, v_new


_ifnode_first_step_jit = jax.jit(
    _ifnode_first_step_impl,
    static_argnames=("v_threshold", "v_reset", "spike_dtype"),
)


def _ifnode_sequence_impl(dv_seq, *, v_threshold, v_reset, spike_dtype):
    T = dv_seq.shape[0]
    spatial_shape = dv_seq.shape[1:]
    dtype = dv_seq.dtype
    total = math.prod(spatial_shape)
    sub = max(_sublane(dtype), _sublane(spike_dtype))
    budget, vmem_limit = _vmem_budget_and_limit()

    granule = sub * _LANES
    pad = _round_up(total, granule) - total
    flat = dv_seq.reshape(T, -1)
    if pad:
        flat = jnp.pad(flat, ((0, 0), (0, pad)))
    rows = (total + pad) // _LANES
    dv3 = flat.reshape(T, rows, _LANES)

    item = np.dtype(dtype).itemsize
    spike_item = np.dtype(spike_dtype).itemsize
    # dv (2 bufs) + spike (2) + v_out (2) in their own dtypes + f32 scratch.
    bytes_per_row = _LANES * (4 * item + 2 * spike_item + 4)
    tile_rows = _choose_tile_rows(rows, sub, bytes_per_row, budget)

    dv_spec = pl.BlockSpec((1, tile_rows, _LANES), lambda i, t: (t, i, 0))
    spike_spec = pl.BlockSpec((1, tile_rows, _LANES), lambda i, t: (t, i, 0))
    v_out_spec = pl.BlockSpec((tile_rows, _LANES), lambda i, t: (i, 0))

    kernel = functools.partial(
        _ifnode_seq_kernel, v_threshold=float(v_threshold), v_reset=float(v_reset))

    spike3, v_out2 = pl.pallas_call(
        kernel,
        out_shape=(
            jax.ShapeDtypeStruct((T, rows, _LANES), spike_dtype),
            jax.ShapeDtypeStruct((rows, _LANES), dtype),
        ),
        grid=(pl.cdiv(rows, tile_rows), T),
        in_specs=[dv_spec],
        out_specs=(spike_spec, v_out_spec),
        scratch_shapes=[pltpu.VMEM((tile_rows, _LANES), jnp.float32)],
        compiler_params=pltpu.CompilerParams(
            dimension_semantics=("parallel", "arbitrary"),
            vmem_limit_bytes=vmem_limit),
    )(dv3)

    if pad:
        spikes = spike3.reshape(T, -1)[:, :total].reshape((T,) + spatial_shape)
        v_final = v_out2.reshape(-1)[:total].reshape(spatial_shape)
    else:
        spikes = spike3.reshape((T,) + spatial_shape)
        v_final = v_out2.reshape(spatial_shape)
    return spikes, v_final


_ifnode_sequence_jit = jax.jit(
    _ifnode_sequence_impl,
    static_argnames=("v_threshold", "v_reset", "spike_dtype"),
)


# ----------------------------------------------------------------------------
# Public wrappers
# ----------------------------------------------------------------------------
def ifnode_forward(v, dv, *, v_threshold=0.75, v_reset=0.0, spike_dtype=None):
    """Single-timestep IFNode forward with an existing membrane state.
    NOTE: `v` is donated (membrane update is in place)."""
    assert v.shape == dv.shape and v.dtype == dv.dtype
    return _ifnode_forward_jit(
        v, dv, v_threshold=float(v_threshold), v_reset=float(v_reset),
        spike_dtype=np.dtype(spike_dtype if spike_dtype is not None else dv.dtype))


def ifnode_forward_first_step(dv, *, v_threshold=0.75, v_reset=0.0, spike_dtype=None):
    """First-timestep fast path: v == v_reset (scalar) is baked into the kernel."""
    return _ifnode_first_step_jit(
        dv, v_threshold=float(v_threshold), v_reset=float(v_reset),
        spike_dtype=np.dtype(spike_dtype if spike_dtype is not None else dv.dtype))


def ifnode_forward_sequence(dv_seq, *, v_threshold=0.75, v_reset=0.0, spike_dtype=None):
    """Fused T-step IFNode: dv_seq is [T, ...spatial...]; membrane starts at
    v_reset and stays resident in VMEM (float32) across all T steps."""
    return _ifnode_sequence_jit(
        dv_seq, v_threshold=float(v_threshold), v_reset=float(v_reset),
        spike_dtype=np.dtype(spike_dtype if spike_dtype is not None else dv_seq.dtype))


class IFNodeJax:
    """Stateful wrapper mirroring the PyTorch IFNode module (forward only)."""

    def __init__(self, v_threshold=0.75, v_reset=0.0, spike_dtype=None):
        self.v_threshold = float(v_threshold)
        self.v_reset = float(v_reset)
        self.spike_dtype = spike_dtype
        self.v = self.v_reset  # scalar until first forward (matches PyTorch init)

    def __call__(self, dv):
        if isinstance(self.v, jax.Array) and jnp.ndim(self.v) > 0:
            spike, v_new = ifnode_forward(
                self.v, dv, v_threshold=self.v_threshold, v_reset=self.v_reset,
                spike_dtype=self.spike_dtype)
        else:
            spike, v_new = ifnode_forward_first_step(
                dv, v_threshold=self.v_threshold, v_reset=self.v_reset,
                spike_dtype=self.spike_dtype)
        self.v = v_new
        return spike

    def run_sequence(self, dv_seq):
        spikes, v_final = ifnode_forward_sequence(
            dv_seq, v_threshold=self.v_threshold, v_reset=self.v_reset,
            spike_dtype=self.spike_dtype)
        self.v = v_final
        return spikes

    def reset(self):
        self.v = self.v_reset


if __name__ == "__main__":
    key = jax.random.PRNGKey(0)
    k1, k2, k3 = jax.random.split(key, 3)

    V_TH, V_RS = 0.75, 0.0
    shape = (2, 4, 16, 16)  # NCHW conv-activation-like input

    def ref_step(v, dv):
        v = v + dv
        pre = v - V_TH
        spike = (pre > 0).astype(dv.dtype)
        v = jnp.where(pre > 0, V_RS, v)
        return spike, v

    # --- single-step stateful path (first-step fast path + in-place update) ---
    dv0 = jax.random.normal(k1, shape, dtype=jnp.float32)
    dv1 = jax.random.normal(k2, shape, dtype=jnp.float32)

    node = IFNodeJax(v_threshold=V_TH, v_reset=V_RS)
    s0 = node(dv0)   # first timestep: v == v_reset baked into kernel
    s1 = node(dv1)   # second timestep: carried membrane, aliased/donated update
    s1 = jax.block_until_ready(s1)
    v_state = jax.block_until_ready(node.v)

    s0_ref, v_ref = ref_step(jnp.full(shape, V_RS, jnp.float32), dv0)
    s1_ref, v_ref = ref_step(v_ref, dv1)
    assert jnp.array_equal(s0, s0_ref)
    assert jnp.array_equal(s1, s1_ref)
    assert jnp.allclose(v_state, v_ref)

    # --- fused multi-timestep path (membrane resident in VMEM across T steps) ---
    T = 4
    dv_seq = jax.random.normal(k3, (T,) + shape, dtype=jnp.float32)
    node.reset()
    spikes = node.run_sequence(dv_seq)
    spikes = jax.block_until_ready(spikes)
    v_final = jax.block_until_ready(node.v)

    v_r = jnp.full(shape, V_RS, jnp.float32)
    for t in range(T):
        s_r, v_r = ref_step(v_r, dv_seq[t])
        assert jnp.array_equal(spikes[t], s_r)
    assert jnp.allclose(v_final, v_r)

    print("KERNEL_OK")
</pallas_src>

<mosaic_0001>
module attributes {stable_mosaic.version = 11 : i64} {
  func.func @_ifnode_first_step_kernel(%arg0: i32, %arg1: memref<8x128xf32, #tpu.memory_space<vmem>>, %arg2: memref<8x128xf32, #tpu.memory_space<vmem>>, %arg3: memref<8x128xf32, #tpu.memory_space<vmem>>) attributes {dimension_semantics = [#tpu.dimension_semantics<parallel>], iteration_bounds = array<i64: 2>, scalar_prefetch = 0 : i64, scratch_operands = 0 : i64, tpu.core_type = #tpu.core_type<tc>, window_params = [{transform_indices = @transform_0, window_bounds = array<i64: 8, 128>}, {transform_indices = @transform_1, window_bounds = array<i64: 8, 128>}, {transform_indices = @transform_2, window_bounds = array<i64: 8, 128>}]} {
    %c0 = arith.constant 0 : index
    %c0_0 = arith.constant 0 : index
    %0 = vector.load %arg1[%c0, %c0_0] : memref<8x128xf32, #tpu.memory_space<vmem>>, vector<8x128xf32>
    %cst = arith.constant 0.000000e+00 : f32
    %1 = vector.broadcast %cst : f32 to vector<8x128xf32>
    %2 = arith.addf %0, %1 : vector<8x128xf32>
    %cst_1 = arith.constant 7.500000e-01 : f32
    %3 = vector.broadcast %cst_1 : f32 to vector<8x128xf32>
    %4 = arith.subf %2, %3 : vector<8x128xf32>
    %cst_2 = arith.constant 0.000000e+00 : f32
    %5 = vector.broadcast %cst_2 : f32 to vector<8x128xf32>
    %6 = arith.cmpf ogt, %4, %5 : vector<8x128xf32>
    %7 = arith.extui %6 : vector<8x128xi1> to vector<8x128xi32>
    %8 = arith.sitofp %7 : vector<8x128xi32> to vector<8x128xf32>
    %c0_3 = arith.constant 0 : index
    %c0_4 = arith.constant 0 : index
    %9 = vector.load %arg2[%c0_3, %c0_4] : memref<8x128xf32, #tpu.memory_space<vmem>>, vector<8x128xf32>
    tpu.vector_store %arg2[%c0_3, %c0_4], %8 {strides = array<i32>} : memref<8x128xf32, #tpu.memory_space<vmem>>, vector<8x128xf32>,
    %cst_5 = arith.constant 0.000000e+00 : f32
    %10 = vector.broadcast %cst_5 : f32 to vector<8x128xf32>
    %11 = arith.select %6, %10, %2 : vector<8x128xi1>, vector<8x128xf32>
    %c0_6 = arith.constant 0 : index
    %c0_7 = arith.constant 0 : index
    %12 = vector.load %arg3[%c0_6, %c0_7] : memref<8x128xf32, #tpu.memory_space<vmem>>, vector<8x128xf32>
    tpu.vector_store %arg3[%c0_6, %c0_7], %11 {strides = array<i32>} : memref<8x128xf32, #tpu.memory_space<vmem>>, vector<8x128xf32>,
    return
  }
  func.func @transform_0(%arg0: i32) -> (i32, i32) {
    %c0_i32 = arith.constant 0 : i32
    %c0_i32_0 = arith.constant 0 : i32
    return %arg0, %c0_i32 : i32, i32
  }
  func.func @transform_1(%arg0: i32) -> (i32, i32) {
    %c0_i32 = arith.constant 0 : i32
    %c0_i32_0 = arith.constant 0 : i32
    return %arg0, %c0_i32 : i32, i32
  }
  func.func @transform_2(%arg0: i32) -> (i32, i32) {
    %c0_i32 = arith.constant 0 : i32
    %c0_i32_0 = arith.constant 0 : i32
    return %arg0, %c0_i32 : i32, i32
  }
}

</mosaic_0001>

<bundles_post_ra>
// kernel: _ifnode_first_step_impl.1
= control target key start
LH: loop header
LB: loop body
LE: loop exit
PB: predicated region body
PF: predicated region fallthrough
CT: control target
= control target key end

     0   :  { %s268_s9 = smov 0   ;;  %s297_s0 = inlined_call_operand.vmem [shape: f32[16,128], index: 0, kind: input, shape index: {}]   ;;  %s298_s1 = inlined_call_operand.vmem [shape: f32[16,128], index: 1, kind: output, shape index: {0}]   ;;  %s299_s2 = inlined_call_operand.vmem [shape: f32[16,128], index: 2, kind: output, shape index: {1}]  }
   0x1 LB: > { %s243_s10 = sadd.s32 4294967295, %s270_s9   ;;  %p247_p0 = scmp.ge.s32.totalorder %s270_s9, 1  ;;  %s270_s9 = sphi %s268_s9, %s13_s9  }
   0x2   : > { %p114_p1 = scmp.lt.s32.totalorder %s270_s9, 3 }
   0x4   : > { %p115_p2 = pnand %p247_p0, %p114_p1 }
   0x5   : > { %p138_p3 = scmp.lt.s32.totalorder (!%p115_p2), %s243_s10, 1 }
   0x6   : > { %118 = sbr.rel (%p115_p2) target bundleno = 20 (0x14), region = 24 }
   0xb   : > { %s301_s10 = smov (!%p138_p3, %s243_s10), 1  ;;  %v272_v2 = vmov 0.0  }
   0xc   : > { %s248_s11 = sshll.u32 %s301_s10, 3 }
   0xd   : > { %s141_s14 = scalar_lea.vmem %s297_s0, %s248_s11  ;;  %s145_s17 = scalar_lea.vmem %s298_s1, %s248_s11 }
   0xe   : > { %v150_v0 = vld [vmem:[%s141_s14] sm:$0xff]  ;;  %s149_s20 = scalar_lea.vmem %s299_s2, %s248_s11 }
   0xf   : > { %v251_v1 = vadd.f32 -0.75, %v150_v0 }
  0x11   : > { %vm153_vm0 = vcmp.gt.f32.partialorder %v251_v1, 0.0 }
  0x12   : > { %v252_v3 = vsel %vm153_vm0, 1.0, %v272_v2  ;;  %v157_v4 = vsel %vm153_vm0, 0.0, %v150_v0 }
  0x13   : > { %156 = vst [vmem:[%s145_s17] sm:$0xff] %v252_v3  ;;  %158 = vst [vmem:[%s149_s20] sm:$0xff] %v157_v4 }
  0x14 PF: > { %s13_s9 = sadd.s32 1, %s270_s9  }
  0x15   : > { %p10_p4 = scmp.ge.s32.totalorder %s13_s9, 4  }
  0x17   :  { %12 = sbr.rel (!%p10_p4) target bundleno = 1 (0x1), region = 66 }

</bundles_post_ra>
